<compile_context>
chip_gen: v7x
topology: tpu7x:2x2x1
jax: 0.10.0
libtpu: 0.0.40
codegen_flags: <defaults>
</compile_context>

<pallas_src>
import jax
import jax.numpy as jnp
from jax.experimental import pallas as pl
from jax.experimental.pallas import tpu as pltpu


def _round_up(v: int, m: int) -> int:
    return ((v + m - 1) // m) * m


def _fc2_kernel(x_ref, w_ref, b_ref, o_ref):
    # x_ref: (bt, in_f)       current batch tile
    # w_ref: (in_f, out_f)    pre-transposed weight, VMEM-resident across steps
    # b_ref: (1, out_f)       bias row, VMEM-resident across steps
    # o_ref: (bt, out_f)      output tile (out_f == full array dim)
    y = jnp.dot(x_ref[...], w_ref[...], preferred_element_type=jnp.float32)
    o_ref[...] = (y + b_ref[...]).astype(o_ref.dtype)


def fc2_forward(x, weight, bias, *, block_b: int = 4096):
    """Pallas implementation of _FC2.forward: y = x @ W.T + b.

    x:      (B, in_f)
    weight: (out_f, in_f)   (PyTorch nn.Linear layout)
    bias:   (out_f,)
    """
    B, in_f = x.shape
    out_f = weight.shape[0]

    # ---- trace-time plumbing (outside the kernel) -------------------------
    w_t = weight.T                      # (in_f, out_f), consumed directly by MXU
    b_row = bias.reshape(1, out_f)

    # Batch tiling: pad only to the sublane granule (8), then pick the number
    # of grid steps and derive a tile that is a multiple of 8.
    b8 = _round_up(max(B, 1), 8)
    n_steps = pl.cdiv(b8, block_b)
    if b8 >= 2048:
        # v7x has 2 TensorCores; keep >= 2 balanced steps for large batches.
        n_steps = max(n_steps, 2)
    bt = _round_up(pl.cdiv(b8, n_steps), 8)          # bt % 8 == 0 always
    b_padded = bt * n_steps                           # small overshoot only
    if b_padded != B:
        x = jnp.pad(x, ((0, b_padded - B), (0, 0)))

    # VMEM budget: double-buffered x + out tiles, plus resident weight/bias.
    isz = jnp.dtype(x.dtype).itemsize
    vmem_needed = 2 * bt * (in_f + out_f) * isz + (in_f + 1) * out_f * isz
    vmem_limit = int(min(max(4 * vmem_needed, 16 << 20), 48 << 20))

    cost = pl.CostEstimate(
        flops=2 * b_padded * in_f * out_f,
        transcendentals=0,
        bytes_accessed=(b_padded * in_f + b_padded * out_f
                        + in_f * out_f + out_f) * isz,
    )

    out = pl.pallas_call(
        _fc2_kernel,
        out_shape=jax.ShapeDtypeStruct((b_padded, out_f), x.dtype),
        grid_spec=pltpu.PrefetchScalarGridSpec(
            num_scalar_prefetch=0,
            grid=(n_steps,),
            in_specs=[
                # batch tile of x
                pl.BlockSpec((bt, in_f), lambda i: (i, 0),
                             memory_space=pltpu.MemorySpace.VMEM),
                # weight: same block every step -> stays resident in VMEM
                pl.BlockSpec((in_f, out_f), lambda i: (0, 0),
                             memory_space=pltpu.MemorySpace.VMEM),
                # bias: same block every step -> stays resident in VMEM
                pl.BlockSpec((1, out_f), lambda i: (0, 0),
                             memory_space=pltpu.MemorySpace.VMEM),
            ],
            out_specs=pl.BlockSpec((bt, out_f), lambda i: (i, 0),
                                   memory_space=pltpu.MemorySpace.VMEM),
        ),
        compiler_params=pltpu.CompilerParams(
            dimension_semantics=("parallel",),   # megacore/v7x: shard batch
            vmem_limit_bytes=vmem_limit,
        ),
        cost_estimate=cost,
    )(x, w_t, b_row)

    # TODO(synk): if the caller can consume bf16, carry x/out in bf16 to halve
    # HBM traffic (accumulation already happens in f32 on the MXU).
    return out if b_padded == B else out[:B]


def init_fc2_params(key, in_features=10, out_features=50, dtype=jnp.float32):
    # Deterministic init mimicking nn.Linear defaults (uniform +/- 1/sqrt(fan_in)).
    kw, kb = jax.random.split(key)
    bound = 1.0 / jnp.sqrt(jnp.asarray(in_features, dtype))
    weight = jax.random.uniform(kw, (out_features, in_features), dtype, -bound, bound)
    bias = jax.random.uniform(kb, (out_features,), dtype, -bound, bound)
    return weight, bias


if __name__ == "__main__":
    key = jax.random.PRNGKey(0)
    k_x, k_x2, k_p = jax.random.split(key, 3)

    in_features, out_features = 10, 50
    weight, bias = init_fc2_params(k_p, in_features, out_features)

    # Case 1: small, sublane-aligned batch.
    batch = 8
    x = jax.random.normal(k_x, (batch, in_features), dtype=jnp.float32)
    out = jax.block_until_ready(fc2_forward(x, weight, bias))
    ref = x @ weight.T + bias
    assert out.shape == (batch, out_features)
    assert jnp.allclose(out, ref, atol=1e-5, rtol=1e-5)

    # Case 2: odd batch exercising the pad-to-8 / row-slice path.
    batch2 = 13
    x2 = jax.random.normal(k_x2, (batch2, in_features), dtype=jnp.float32)
    out2 = jax.block_until_ready(fc2_forward(x2, weight, bias))
    ref2 = x2 @ weight.T + bias
    assert out2.shape == (batch2, out_features)
    assert jnp.allclose(out2, ref2, atol=1e-5, rtol=1e-5)

    print("KERNEL_OK")
</pallas_src>

<mosaic_0001>
module attributes {stable_mosaic.version = 11 : i64} {
  func.func @_fc2_kernel(%arg0: i32, %arg1: memref<8x10xf32, #tpu.memory_space<vmem>>, %arg2: memref<10x50xf32, #tpu.memory_space<vmem>>, %arg3: memref<1x50xf32, #tpu.memory_space<vmem>>, %arg4: memref<8x50xf32, #tpu.memory_space<vmem>>) attributes {dimension_semantics = [#tpu.dimension_semantics<parallel>], iteration_bounds = array<i64: 1>, scalar_prefetch = 0 : i64, scratch_operands = 0 : i64, tpu.core_type = #tpu.core_type<tc>, window_params = [{transform_indices = @transform_0, window_bounds = array<i64: 8, 10>}, {pipeline_mode = #tpu.pipeline_mode<synchronous>, transform_indices = @transform_1, window_bounds = array<i64: 10, 50>}, {pipeline_mode = #tpu.pipeline_mode<synchronous>, transform_indices = @transform_2, window_bounds = array<i64: 1, 50>}, {transform_indices = @transform_3, window_bounds = array<i64: 8, 50>}]} {
    %c0 = arith.constant 0 : index
    %c0_0 = arith.constant 0 : index
    %0 = vector.load %arg1[%c0, %c0_0] : memref<8x10xf32, #tpu.memory_space<vmem>>, vector<8x10xf32>
    %c0_1 = arith.constant 0 : index
    %c0_2 = arith.constant 0 : index
    %1 = vector.load %arg2[%c0_1, %c0_2] : memref<10x50xf32, #tpu.memory_space<vmem>>, vector<10x50xf32>
    %cst = arith.constant dense<0.000000e+00> : vector<8x50xf32>
    %2 = tpu.matmul %0, %1, %cst {dimension_numbers = #tpu.dot_dimension_numbers<[1], [0], [0], [1], [0, 0, 1, 1], [], []>} : vector<8x10xf32>, vector<10x50xf32>, vector<8x50xf32> -> vector<8x50xf32>
    %c0_3 = arith.constant 0 : index
    %c0_4 = arith.constant 0 : index
    %3 = vector.load %arg3[%c0_3, %c0_4] : memref<1x50xf32, #tpu.memory_space<vmem>>, vector<1x50xf32>
    %4 = vector.broadcast %3 : vector<1x50xf32> to vector<8x50xf32>
    %5 = arith.addf %2, %4 : vector<8x50xf32>
    %c0_5 = arith.constant 0 : index
    %c0_6 = arith.constant 0 : index
    %6 = vector.load %arg4[%c0_5, %c0_6] : memref<8x50xf32, #tpu.memory_space<vmem>>, vector<8x50xf32>
    tpu.vector_store %arg4[%c0_5, %c0_6], %5 {strides = array<i32>} : memref<8x50xf32, #tpu.memory_space<vmem>>, vector<8x50xf32>,
    return
  }
  func.func @transform_0(%arg0: i32) -> (i32, i32) {
    %c0_i32 = arith.constant 0 : i32
    %c0_i32_0 = arith.constant 0 : i32
    return %arg0, %c0_i32 : i32, i32
  }
  func.func @transform_1(%arg0: i32) -> (i32, i32) {
    %c0_i32 = arith.constant 0 : i32
    %c0_i32_0 = arith.constant 0 : i32
    %c0_i32_1 = arith.constant 0 : i32
    return %c0_i32, %c0_i32_0 : i32, i32
  }
  func.func @transform_2(%arg0: i32) -> (i32, i32) {
    %c0_i32 = arith.constant 0 : i32
    %c0_i32_0 = arith.constant 0 : i32
    %c0_i32_1 = arith.constant 0 : i32
    return %c0_i32, %c0_i32_0 : i32, i32
  }
  func.func @transform_3(%arg0: i32) -> (i32, i32) {
    %c0_i32 = arith.constant 0 : i32
    %c0_i32_0 = arith.constant 0 : i32
    return %arg0, %c0_i32 : i32, i32
  }
}

</mosaic_0001>

<bundles_post_ra>
// kernel: tpu_custom_call.1
= control target key start
LH: loop header
LB: loop body
LE: loop exit
PB: predicated region body
PF: predicated region fallthrough
CT: control target
= control target key end

     0   :  { %8 = vsyncpa [#allocation3], 0  ;;  %s320_s0 = inlined_call_operand.hbm [shape: f32[8,10], index: 0, kind: input, shape index: {}]   ;;  %s321_s1 = inlined_call_operand.hbm [shape: f32[10,50], index: 1, kind: input, shape index: {}]   ;;  %s322_s2 = inlined_call_operand.vmem [shape: f32[1,50], index: 2, kind: input, shape index: {}]   ;;  %s323_s3 = inlined_call_operand.hbm [shape: f32[8,50], index: 3, kind: output, shape index: {}]  }
   0x1   :  { %9 = vsyncpa [#allocation6], 0 }
   0x2   :  { %10 = vsyncpa [#allocation4], 0  ;;  %s245_s12 = smov [#allocation2]   ;;  %s246_s14 = smov [#allocation5]  }
   0x3   :  { %s17_s13 = sshll.u32 %s245_s12, 4  ;;  %s26_s15 = sshll.u32 %s246_s14, 4  ;;  %s18_s13 = int_to_ptr.vmem [resolvable:$true] %s17_s13  ;;  %s274_s15 = int_to_ptr.vmem [resolvable:$true] %s26_s15 }
   0x4   :  { %s173_s18 = scalar_lea.hbm %s320_s0, 128 }
   0x5   :  { %p174_p0 = scmp.ne.s32.totalorder %s320_s0, %s173_s18  ;;  %p177_p1 = scmp.lt.u32.totalorder %s173_s18, %s320_s0 }
   0x7   :  { %p179_p2 = pnand %p177_p1, %p174_p0 }
   0x9   :  { %182 = shalt.err (!%p179_p2)
}
   0xa   :  { %s183_s23 = scalar_lea.vmem %s18_s13, 128  ;;  %p188_p4 = scmp.lt.s32.totalorder %s18_s13, %s18_s13 }
   0xb   :  { %p184_p3 = scmp.ne.s32.totalorder %s18_s13, %s183_s23  ;;  %p189_p5 = scmp.lt.s32.totalorder %s183_s23, %s183_s23 }
   0xd   :  { %p190_p6 = por %p189_p5, %p188_p4 }
   0xf   :  { %p191_p7 = pnand %p190_p6, %p184_p3 }
  0x11   :  { %194 = shalt.err (!%p191_p7)
}
  0x12   :  { %20 = dma.hbm_to_vmem [thread:$0]  %s320_s0, 128, %s18_s13, [#allocation3]  }
  0x13   :  { %s195_s28 = scalar_lea.hbm %s321_s1, 256 }
  0x14   :  { %p196_p8 = scmp.ne.s32.totalorder %s321_s1, %s195_s28  ;;  %p199_p9 = scmp.lt.u32.totalorder %s195_s28, %s321_s1 }
  0x16   :  { %p201_p10 = pnand %p199_p9, %p196_p8 }
  0x18   :  { %204 = shalt.err (!%p201_p10)
}
  0x19   :  { %s205_s6 = scalar_lea.vmem %s274_s15, 256  ;;  %p210_p12 = scmp.lt.s32.totalorder %s274_s15, %s274_s15 }
  0x1a   :  { %p206_p11 = scmp.ne.s32.totalorder %s274_s15, %s205_s6  ;;  %p211_p13 = scmp.lt.s32.totalorder %s205_s6, %s205_s6 }
  0x1c   :  { %p212_p0 = por %p211_p13, %p210_p12 }
  0x1e   :  { %p213_p1 = pnand %p212_p0, %p206_p11 }
  0x20   :  { %216 = shalt.err (!%p213_p1)
}
  0x21   :  { %s247_s0 = smov 128   ;;  %s248_s7 = smov 8  }
  0x22   :  { %32 = dma.hbm_to_vmem [thread:$0]  %s321_s1, 256, %s274_s15, [#allocation6], %s247_s0, %s247_s0, %s248_s7  }
  0x23   :  { %239 = dma.done.wait [#allocation3], 128  }
  0x24   :  { %240 = vsyncadd [#allocation3], 4294967168 }
  0x25   :  { %241 = dma.done.wait [#allocation6], 256  }
  0x26   :  { %242 = vsyncadd [#allocation6], 4294967040  ;;  %v249_v0 = vmov 0.0|0.0   ;;  %vm250_vm0 = vmmov 0   ;;  %v251_v1 = vmov 0.0   ;;  %vm55_vm1 = vcmask 1041408  }
  0x27   :  { %160 = vmatprep.subr.bf16.mxu0 %v249_v0  ;;  %157 = vmatprep.mubr.msk.f32.mxu0 %vm250_vm0, %v251_v1  ;;  %v42_v2 = vld [vmem:[#allocation5] sm:$0xff]  ;;  %v43_v3 = vld [vmem:[#allocation5 + $0x8] sm:$0x3]  ;;  %vm252_vm2 = vmmov 1   ;;  %v41_v5 = vld [vmem:[#allocation2] sm:$0xff]  ;;  %vm51_vm4 = vcmask 80896  }
  0x28   :  { %vm162_vm3 = vmpackc.low %vm55_vm1, %vm252_vm2  ;;  %v161_v4 = vpack.c.bf16 %v43_v3, %v42_v2  ;;  %v147_v6 = vld [vmem:[%s322_s2] ss:$0 sm:$0xff]  ;;  %s253_s11 = smov [#allocation7]   ;;  %vm129_vm5 = vcmask 408576  }
  0x29   :  { %s137_s12 = sshll.u32 %s253_s11, 4  ;;  %s138_s12 = int_to_ptr.vmem [resolvable:$true] %s137_s12 }
  0x2a   :  { %163 = vmatpush3.bf16.msk.msra.mxu0 %vm162_vm3, %v161_v4  ;;  %s217_s13 = scalar_lea.vmem %s138_s12, 128  ;;  %p222_p3 = scmp.lt.s32.totalorder %s138_s12, %s138_s12 }
  0x2b   :  { %p218_p2 = scmp.ne.s32.totalorder %s138_s12, %s217_s13  ;;  %p223_p4 = scmp.lt.s32.totalorder %s217_s13, %s217_s13 }
  0x2d   :  { %158 = vmatmul.mubr.msk.f32.vlgmr.msra.gmra.mrb[0].mxu0 %vm51_vm4, %v41_v5  ;;  %p224_p5 = por %p223_p4, %p222_p3 }
  0x2f   :  { %p225_p6 = pnand %p224_p5, %p218_p2 }
 0x100   :  { %v125_v7 = vpop.f32.mrb[0].mxu0 }
 0x101   :  { %v126_v8 = vadd.f32 %v147_v6, %v125_v7  ;;  %v159_v9 = vpop.f32.mrb[1].mxu0 }
 0x103   :  { %130 = vst.msk [vmem:[#allocation7] sm:$0xff] %vm129_vm5, %v126_v8 }
 0x104   :  { %228 = shalt.err (!%p225_p6)
}
 0x105   :  { %s229_s16 = scalar_lea.hbm %s323_s3, 128 }
 0x106   :  { %p230_p7 = scmp.ne.s32.totalorder %s323_s3, %s229_s16  ;;  %p233_p8 = scmp.lt.u32.totalorder %s229_s16, %s323_s3 }
 0x108   :  { %p235_p9 = pnand %p233_p8, %p230_p7 }
 0x10a   :  { %238 = shalt.err (!%p235_p9)
}
 0x10b   :  { %140 = dma.vmem_to_hbm [thread:$0]  %s138_s12, 128, %s323_s3, [#allocation4]  }
 0x10c   :  { %243 = dma.done.wait [#allocation4], 128  }
 0x10d   :  { %244 = vsyncadd [#allocation4], 4294967168 }
 0x10e   :  { %144 = vsyncpa [#allocation3], 1 }
 0x10f   :  { %145 = vsyncpa [#allocation6], 1 }
 0x110   :  { %146 = vsyncpa [#allocation4], 1 }

</bundles_post_ra>
